<compile_context>
chip_gen: v7x
topology: tpu7x:2x2x1
jax: 0.10.0
libtpu: 0.0.40
codegen_flags: <defaults>
</compile_context>

<pallas_src>
import jax
import jax.numpy as jnp
from jax.experimental import pallas as pl
from jax.experimental.pallas import tpu as pltpu


def _round_up(a, m):
    return ((a + m - 1) // m) * m


def _cdiv(a, m):
    return (a + m - 1) // m


def _vmem_capacity_bytes():
    try:
        return int(pltpu.get_tpu_info().vmem_capacity_bytes)
    except Exception:
        return 64 << 20  # conservative default (v7x per-TC VMEM)


def _largest_divisor_tile(n, max_tile, step=128):
    """Largest multiple of `step` that divides n and is <= max_tile (None if none)."""
    best = None
    t = step
    lim = min(n, max_tile)
    while t <= lim:
        if n % t == 0:
            best = t
        t += step
    return best


# ---------------------------------------------------------------------------
# Kernels
# ---------------------------------------------------------------------------
def _make_fused_kernel(w_is_out_in, cast_w):
    """Weight fully resident: dot -> +bias -> L2-normalize -> store, no scratch."""

    def kernel(x_ref, w_ref, b_ref, o_ref):
        xv = x_ref[...]
        wv = w_ref[...]
        if cast_w:
            wv = wv.astype(xv.dtype)          # in-VMEM cast (no extra HBM pass)
        if w_is_out_in:
            # W:[D_out, K], contract dim 1 with dim 1 == x @ W^T (no transpose materialized)
            y = jax.lax.dot_general(xv, wv, (((1,), (1,)), ((), ())),
                                    preferred_element_type=jnp.float32)
        else:
            y = jnp.dot(xv, wv, preferred_element_type=jnp.float32)
        y = y + b_ref[...]
        ss = jnp.sum(y * y, axis=-1, keepdims=True)
        inv = jax.lax.rsqrt(jnp.maximum(ss, 1e-30))   # eps: no NaN in zero-padded rows
        o_ref[...] = (y * inv).astype(o_ref.dtype)

    return kernel


def _make_accum_kernel(w_is_out_in, cast_w):
    """K-tiled: f32 accumulator, init at k==0, bias + L2-norm finalize at k==last."""

    def kernel(x_ref, w_ref, b_ref, o_ref, acc_ref):
        k = pl.program_id(1)

        @pl.when(k == 0)
        def _():
            acc_ref[...] = jnp.zeros_like(acc_ref)

        xv = x_ref[...]
        wv = w_ref[...]
        if cast_w:
            wv = wv.astype(xv.dtype)
        if w_is_out_in:
            acc_ref[...] += jax.lax.dot_general(xv, wv, (((1,), (1,)), ((), ())),
                                                preferred_element_type=jnp.float32)
        else:
            acc_ref[...] += jnp.dot(xv, wv, preferred_element_type=jnp.float32)

        @pl.when(k == pl.num_programs(1) - 1)
        def _():
            y = acc_ref[...] + b_ref[...]
            ss = jnp.sum(y * y, axis=-1, keepdims=True)
            inv = jax.lax.rsqrt(jnp.maximum(ss, 1e-30))
            o_ref[...] = (y * inv).astype(o_ref.dtype)

    return kernel


# ---------------------------------------------------------------------------
# Wrapper
# ---------------------------------------------------------------------------
def target_forward(x, fc_weight, fc_bias=None, name="RN", matmul_dtype=None,
                   force_k_tiling=False):
    """Forward pass of Target.

    name='RN'          : fc_weight is nn.Linear weight [D_out, D_in], fc_bias is [D_out].
    name contains 'vit': fc_weight is a projection [D_in, D_out] (x @ fc), no bias.
    matmul_dtype       : optional dtype for x on the MXU (e.g. bf16).  NOTE: for the
                         HBM-traffic win the *weight* must already be stored in that
                         dtype by the caller; this wrapper never copies/casts W in HBM.
    force_k_tiling     : testing knob that forces the K-streamed accumulate path.
    """
    orig_dtype = x.dtype
    lead = x.shape[:-1]
    D_in = x.shape[-1]
    x = x.reshape(-1, D_in)
    B = x.shape[0]

    vit = "vit" in name
    if vit:
        assert fc_weight.shape[0] == D_in
        D_out = fc_weight.shape[1]
        w_is_out_in = False
    else:
        D_out, d_in_w = fc_weight.shape
        assert d_in_w == D_in
        w_is_out_in = True

    w = fc_weight                      # never padded / cast in the wrapper
    if matmul_dtype is not None and x.dtype != matmul_dtype:
        x = x.astype(matmul_dtype)     # x is small; W should already live in matmul_dtype

    if (not vit) and (fc_bias is not None):
        b = fc_bias.astype(jnp.float32).reshape(1, D_out)
    else:
        b = jnp.zeros((1, D_out), jnp.float32)

    cast_w = (w.dtype != x.dtype)      # in-kernel per-block cast (== fc.to(x.dtype))

    x_itemsize = jnp.dtype(x.dtype).itemsize
    w_itemsize = jnp.dtype(w.dtype).itemsize
    o_itemsize = jnp.dtype(orig_dtype).itemsize
    w_bytes = D_in * D_out * w_itemsize
    bias_bytes = 2 * D_out * 4

    # ---- generation-aware VMEM budget ----
    vmem_cap = _vmem_capacity_bytes()
    usable = max(vmem_cap - (12 << 20), 16 << 20)   # headroom for mosaic internals

    # sublane packing of the MXU input dtype (8 f32 / 16 bf16 / 32 int8-fp8)
    pack = max(8, 32 // x_itemsize)
    B8 = _round_up(max(B, 1), pack)

    def fits_resident(tb):
        # budget conservatively for 2x buffers even though the invariant weight is
        # requested single-buffered (keeps the Buffered(1) fallback path safe).
        return (2 * tb * D_in * x_itemsize + 2 * w_bytes
                + 2 * tb * D_out * o_itemsize + bias_bytes) <= usable

    resident = (not force_k_tiling) and fits_resident(pack)

    if resident:
        # ------------- weight fully resident: fused single-pass kernel -------------
        nk, TK, D_in_p = 1, D_in, D_in
        per_row = 2 * D_in * x_itemsize + 2 * D_out * o_itemsize
        tb_cap = 512 if vmem_cap > (96 << 20) else 256
        tb_fit = max(pack, ((usable - 2 * w_bytes - bias_bytes) // per_row) // pack * pack)
        tb_max = min(tb_fit, tb_cap)
        nb = max(1, _cdiv(B8, tb_max))
        if nb == 1 and B8 >= max(16, 2 * pack):
            nb = 2                      # let v7x's second TensorCore take half the batch
        TB = _round_up(_cdiv(B8, nb), pack)
        nb = _cdiv(B8, TB)
    else:
        # ------------- K-streamed accumulation (very wide D_in) -------------
        max_tk = min(max(128, ((usable // 2) // max(1, 2 * D_out * w_itemsize)) // 128 * 128),
                     4096, max(128, D_in))
        if force_k_tiling:
            max_tk = 128
        TK = _largest_divisor_tile(D_in, max_tk)
        if TK is None:
            # Rare fallback (D_in not a multiple of 128): one-time zero-pad of W along K.
            TK = min(max_tk, 512)
            D_in_p = _round_up(D_in, TK)
            if w_is_out_in:
                w = jnp.pad(w, ((0, 0), (0, D_in_p - D_in)))
            else:
                w = jnp.pad(w, ((0, D_in_p - D_in), (0, 0)))
        else:
            D_in_p = D_in
        nk = D_in_p // TK

        remaining = max(usable - 2 * D_out * TK * w_itemsize - bias_bytes, 0)
        per_row = 2 * TK * x_itemsize + 2 * D_out * o_itemsize + D_out * 4
        tb_fit = max(pack, (remaining // per_row) // pack * pack)
        nb = max(1, _cdiv(B8, tb_fit))  # prefer nb == 1: weight streamed only once
        TB = _round_up(_cdiv(B8, nb), pack)
        nb = _cdiv(B8, TB)

    B_p = nb * TB
    if (B_p, D_in_p) != (B, D_in):
        x = jnp.pad(x, ((0, B_p - B), (0, D_in_p - D_in)))   # x is small; W untouched

    # ---- VMEM limit & cost estimate ----
    if nk == 1:
        need = (2 * TB * D_in_p * x_itemsize + 2 * w_bytes
                + 2 * TB * D_out * o_itemsize + bias_bytes)
    else:
        need = (2 * TB * TK * x_itemsize + 2 * D_out * TK * w_itemsize
                + 2 * TB * D_out * o_itemsize + TB * D_out * 4 + bias_bytes)
    vmem_limit = int(min(max(need + (8 << 20), 32 << 20), vmem_cap - (2 << 20)))

    w_streams = nb if nk > 1 else 1     # weight re-streamed per batch tile when K-tiled
    cost = pl.CostEstimate(
        flops=2 * B_p * D_in_p * D_out,
        transcendentals=B_p,
        bytes_accessed=(B_p * D_in_p * x_itemsize
                        + w_streams * D_out * D_in_p * w_itemsize
                        + D_out * 4
                        + B_p * D_out * o_itemsize),
    )

    def _build(single_buffer):
        def spec(shape, imap, invariant=False):
            if invariant and single_buffer and hasattr(pl, "Buffered"):
                # grid-invariant block: one VMEM copy instead of two
                return pl.BlockSpec(shape, imap, pipeline_mode=pl.Buffered(1))
            return pl.BlockSpec(shape, imap)

        if nk == 1:
            grid = (nb,)
            in_specs = [
                spec((TB, D_in_p), lambda i: (i, 0)),
                spec(tuple(w.shape), lambda i: (0, 0), invariant=True),
                spec((1, D_out), lambda i: (0, 0), invariant=True),
            ]
            out_spec = pl.BlockSpec((TB, D_out), lambda i: (i, 0))
            kernel = _make_fused_kernel(w_is_out_in, cast_w)
            scratch = []
            semantics = ("parallel",)
        else:
            grid = (nb, nk)             # reduction axis last
            if w_is_out_in:
                w_spec = spec((D_out, TK), lambda i, k: (0, k))
            else:
                w_spec = spec((TK, D_out), lambda i, k: (k, 0))
            in_specs = [
                spec((TB, TK), lambda i, k: (i, k)),
                w_spec,
                spec((1, D_out), lambda i, k: (0, 0), invariant=True),
            ]
            out_spec = pl.BlockSpec((TB, D_out), lambda i, k: (i, 0))
            kernel = _make_accum_kernel(w_is_out_in, cast_w)
            scratch = [pltpu.VMEM((TB, D_out), jnp.float32)]
            semantics = ("parallel", "arbitrary")

        return pl.pallas_call(
            kernel,
            out_shape=jax.ShapeDtypeStruct((B_p, D_out), orig_dtype),
            grid_spec=pltpu.PrefetchScalarGridSpec(
                num_scalar_prefetch=0,
                grid=grid,
                in_specs=in_specs,
                out_specs=out_spec,
                scratch_shapes=scratch),
            compiler_params=pltpu.CompilerParams(
                dimension_semantics=semantics,
                vmem_limit_bytes=vmem_limit),
            cost_estimate=cost,
        )

    try:
        out_padded = _build(single_buffer=True)(x, w, b)
    except Exception:
        # Fallback for jax versions where pipeline_mode=pl.Buffered(1) is unsupported.
        out_padded = _build(single_buffer=False)(x, w, b)

    out = out_padded[:B] if B_p != B else out_padded
    return out.reshape(*lead, D_out)


# ---------------------------------------------------------------------------
# Reference + test
# ---------------------------------------------------------------------------
def _reference(x, fc_weight, fc_bias, name="RN"):
    hi = jax.lax.Precision.HIGHEST
    if "vit" in name:
        y = jnp.dot(x, fc_weight.astype(x.dtype), precision=hi)
    else:
        y = jnp.dot(x, fc_weight.T, precision=hi) + fc_bias
    return y / jnp.linalg.norm(y, axis=-1, keepdims=True)


if __name__ == "__main__":
    key = jax.random.PRNGKey(0)
    k_x, k_w, k_b, k_p, k_x2, k_w2, k_b2 = jax.random.split(key, 7)

    # --- RN path (nn.Linear), resident-weight fused kernel ---
    B, D_in, D_out = 8, 32, 64
    x = jax.random.normal(k_x, (B, D_in), dtype=jnp.float32)
    fc_weight = jax.random.normal(k_w, (D_out, D_in), dtype=jnp.float32) * 0.1
    fc_bias = jax.random.normal(k_b, (D_out,), dtype=jnp.float32) * 0.1

    out = jax.block_until_ready(target_forward(x, fc_weight, fc_bias, name="RN"))
    ref = _reference(x, fc_weight, fc_bias, name="RN")
    assert out.shape == (B, D_out)
    assert jnp.allclose(out, ref, atol=1e-4, rtol=1e-4), "RN path mismatch"

    # --- 'vit' path: plain projection matrix [D_in, D_out], no bias ---
    proj = jax.random.normal(k_p, (D_in, D_out), dtype=jnp.float32) * 0.1
    out_vit = jax.block_until_ready(target_forward(x, proj, None, name="vit_b16"))
    ref_vit = _reference(x, proj, None, name="vit_b16")
    assert out_vit.shape == (B, D_out)
    assert jnp.allclose(out_vit, ref_vit, atol=1e-4, rtol=1e-4), "vit path mismatch"

    # --- K-streamed accumulation path (forced, exercises the pl.when accumulate kernel) ---
    B2, D_in2, D_out2 = 16, 256, 128
    x2 = jax.random.normal(k_x2, (B2, D_in2), dtype=jnp.float32)
    fc_w2 = jax.random.normal(k_w2, (D_out2, D_in2), dtype=jnp.float32) * 0.05
    fc_b2 = jax.random.normal(k_b2, (D_out2,), dtype=jnp.float32) * 0.05
    out2 = jax.block_until_ready(
        target_forward(x2, fc_w2, fc_b2, name="RN", force_k_tiling=True))
    ref2 = _reference(x2, fc_w2, fc_b2, name="RN")
    assert out2.shape == (B2, D_out2)
    assert jnp.allclose(out2, ref2, atol=1e-4, rtol=1e-4), "K-tiled RN path mismatch"

    print("KERNEL_OK")
</pallas_src>

<mosaic_0001>
module attributes {stable_mosaic.version = 11 : i64} {
  func.func @kernel(%arg0: i32, %arg1: memref<8x32xf32, #tpu.memory_space<vmem>>, %arg2: memref<64x32xf32, #tpu.memory_space<vmem>>, %arg3: memref<1x64xf32, #tpu.memory_space<vmem>>, %arg4: memref<8x64xf32, #tpu.memory_space<vmem>>) attributes {dimension_semantics = [#tpu.dimension_semantics<parallel>], iteration_bounds = array<i64: 1>, scalar_prefetch = 0 : i64, scratch_operands = 0 : i64, tpu.core_type = #tpu.core_type<tc>, window_params = [{transform_indices = @transform_0, window_bounds = array<i64: 8, 32>}, {pipeline_mode = #tpu.pipeline_mode<synchronous>, transform_indices = @transform_1, window_bounds = array<i64: 64, 32>}, {pipeline_mode = #tpu.pipeline_mode<synchronous>, transform_indices = @transform_2, window_bounds = array<i64: 1, 64>}, {transform_indices = @transform_3, window_bounds = array<i64: 8, 64>}]} {
    %c0 = arith.constant 0 : index
    %c0_0 = arith.constant 0 : index
    %0 = vector.load %arg1[%c0, %c0_0] : memref<8x32xf32, #tpu.memory_space<vmem>>, vector<8x32xf32>
    %c0_1 = arith.constant 0 : index
    %c0_2 = arith.constant 0 : index
    %1 = vector.load %arg2[%c0_1, %c0_2] : memref<64x32xf32, #tpu.memory_space<vmem>>, vector<64x32xf32>
    %cst = arith.constant dense<0.000000e+00> : vector<8x64xf32>
    %2 = tpu.matmul %0, %1, %cst {dimension_numbers = #tpu.dot_dimension_numbers<[1], [1], [0], [0], [0, 0, 1, 0], [], []>} : vector<8x32xf32>, vector<64x32xf32>, vector<8x64xf32> -> vector<8x64xf32>
    %c0_3 = arith.constant 0 : index
    %c0_4 = arith.constant 0 : index
    %3 = vector.load %arg3[%c0_3, %c0_4] : memref<1x64xf32, #tpu.memory_space<vmem>>, vector<1x64xf32>
    %4 = vector.broadcast %3 : vector<1x64xf32> to vector<8x64xf32>
    %5 = arith.addf %2, %4 : vector<8x64xf32>
    %6 = arith.mulf %5, %5 : vector<8x64xf32>
    %cst_5 = arith.constant dense<0.000000e+00> : vector<8xf32>
    %7 = vector.multi_reduction <add>, %6, %cst_5 [1] : vector<8x64xf32> to vector<8xf32>
    %8 = vector.shape_cast %7 : vector<8xf32> to vector<8x1xf32>
    %cst_6 = arith.constant 1.000000e-30 : f32
    %9 = vector.broadcast %cst_6 : f32 to vector<8x1xf32>
    %10 = arith.maximumf %8, %9 : vector<8x1xf32>
    %11 = math.rsqrt %10 : vector<8x1xf32>
    %12 = vector.broadcast %11 : vector<8x1xf32> to vector<8x64xf32>
    %13 = arith.mulf %5, %12 : vector<8x64xf32>
    %c0_7 = arith.constant 0 : index
    %c0_8 = arith.constant 0 : index
    %14 = vector.load %arg4[%c0_7, %c0_8] : memref<8x64xf32, #tpu.memory_space<vmem>>, vector<8x64xf32>
    tpu.vector_store %arg4[%c0_7, %c0_8], %13 {strides = array<i32>} : memref<8x64xf32, #tpu.memory_space<vmem>>, vector<8x64xf32>,
    return
  }
  func.func @transform_0(%arg0: i32) -> (i32, i32) {
    %c0_i32 = arith.constant 0 : i32
    %c0_i32_0 = arith.constant 0 : i32
    return %arg0, %c0_i32 : i32, i32
  }
  func.func @transform_1(%arg0: i32) -> (i32, i32) {
    %c0_i32 = arith.constant 0 : i32
    %c0_i32_0 = arith.constant 0 : i32
    %c0_i32_1 = arith.constant 0 : i32
    return %c0_i32, %c0_i32_0 : i32, i32
  }
  func.func @transform_2(%arg0: i32) -> (i32, i32) {
    %c0_i32 = arith.constant 0 : i32
    %c0_i32_0 = arith.constant 0 : i32
    %c0_i32_1 = arith.constant 0 : i32
    return %c0_i32, %c0_i32_0 : i32, i32
  }
  func.func @transform_3(%arg0: i32) -> (i32, i32) {
    %c0_i32 = arith.constant 0 : i32
    %c0_i32_0 = arith.constant 0 : i32
    return %arg0, %c0_i32 : i32, i32
  }
}

module attributes {stable_mosaic.version = 11 : i64} {
  func.func @kernel(%arg0: i32, %arg1: memref<8x32xf32, #tpu.memory_space<vmem>>, %arg2: memref<64x32xf32, #tpu.memory_space<vmem>>, %arg3: memref<1x64xf32, #tpu.memory_space<vmem>>, %arg4: memref<8x64xf32, #tpu.memory_space<vmem>>) attributes {dimension_semantics = [#tpu.dimension_semantics<parallel>], iteration_bounds = array<i64: 1>, scalar_prefetch = 0 : i64, scratch_operands = 0 : i64, tpu.core_type = #tpu.core_type<tc>, window_params = [{transform_indices = @transform_0, window_bounds = array<i64: 8, 32>}, {pipeline_mode = #tpu.pipeline_mode<synchronous>, transform_indices = @transform_1, window_bounds = array<i64: 64, 32>}, {pipeline_mode = #tpu.pipeline_mode<synchronous>, transform_indices = @transform_2, window_bounds = array<i64: 1, 64>}, {transform_indices = @transform_3, window_bounds = array<i64: 8, 64>}]} {
    %c0 = arith.constant 0 : index
    %c0_0 = arith.constant 0 : index
    %0 = vector.load %arg1[%c0, %c0_0] : memref<8x32xf32, #tpu.memory_space<vmem>>, vector<8x32xf32>
    %c0_1 = arith.constant 0 : index
    %c0_2 = arith.constant 0 : index
    %1 = vector.load %arg2[%c0_1, %c0_2] : memref<64x32xf32, #tpu.memory_space<vmem>>, vector<64x32xf32>
    %cst = arith.constant dense<0.000000e+00> : vector<8x64xf32>
    %2 = tpu.matmul %0, %1, %cst {dimension_numbers = #tpu.dot_dimension_numbers<[1], [1], [0], [0], [0, 0, 1, 0], [], []>} : vector<8x32xf32>, vector<64x32xf32>, vector<8x64xf32> -> vector<8x64xf32>
    %c0_3 = arith.constant 0 : index
    %c0_4 = arith.constant 0 : index
    %3 = vector.load %arg3[%c0_3, %c0_4] : memref<1x64xf32, #tpu.memory_space<vmem>>, vector<1x64xf32>
    %4 = vector.broadcast %3 : vector<1x64xf32> to vector<8x64xf32>
    %5 = arith.addf %2, %4 : vector<8x64xf32>
    %6 = arith.mulf %5, %5 : vector<8x64xf32>
    %cst_5 = arith.constant dense<0.000000e+00> : vector<8xf32>
    %7 = vector.multi_reduction <add>, %6, %cst_5 [1] : vector<8x64xf32> to vector<8xf32>
    %8 = vector.shape_cast %7 : vector<8xf32> to vector<8x1xf32>
    %cst_6 = arith.constant 1.000000e-30 : f32
    %9 = vector.broadcast %cst_6 : f32 to vector<8x1xf32>
    %10 = arith.maximumf %8, %9 : vector<8x1xf32>
    %11 = math.rsqrt %10 : vector<8x1xf32>
    %12 = vector.broadcast %11 : vector<8x1xf32> to vector<8x64xf32>
    %13 = arith.mulf %5, %12 : vector<8x64xf32>
    %c0_7 = arith.constant 0 : index
    %c0_8 = arith.constant 0 : index
    %14 = vector.load %arg4[%c0_7, %c0_8] : memref<8x64xf32, #tpu.memory_space<vmem>>, vector<8x64xf32>
    tpu.vector_store %arg4[%c0_7, %c0_8], %13 {strides = array<i32>} : memref<8x64xf32, #tpu.memory_space<vmem>>, vector<8x64xf32>,
    return
  }
  func.func @transform_0(%arg0: i32) -> (i32, i32) {
    %c0_i32 = arith.constant 0 : i32
    %c0_i32_0 = arith.constant 0 : i32
    return %arg0, %c0_i32 : i32, i32
  }
  func.func @transform_1(%arg0: i32) -> (i32, i32) {
    %c0_i32 = arith.constant 0 : i32
    %c0_i32_0 = arith.constant 0 : i32
    %c0_i32_1 = arith.constant 0 : i32
    return %c0_i32, %c0_i32_0 : i32, i32
  }
  func.func @transform_2(%arg0: i32) -> (i32, i32) {
    %c0_i32 = arith.constant 0 : i32
    %c0_i32_0 = arith.constant 0 : i32
    %c0_i32_1 = arith.constant 0 : i32
    return %c0_i32, %c0_i32_0 : i32, i32
  }
  func.func @transform_3(%arg0: i32) -> (i32, i32) {
    %c0_i32 = arith.constant 0 : i32
    %c0_i32_0 = arith.constant 0 : i32
    return %arg0, %c0_i32 : i32, i32
  }
}

</mosaic_0001>

<bundles_post_ra>
// kernel: tpu_custom_call.1
= control target key start
LH: loop header
LB: loop body
LE: loop exit
PB: predicated region body
PF: predicated region fallthrough
CT: control target
= control target key end

     0   :  { %vm31_vm0 = vcmask 261120   ;;  %v236_v2 = vmov 0.0|0.0   ;;  %vm237_vm2 = vmmov 0   ;;  %v238_v5 = vmov 0.0   ;;  %s317_s0 = inlined_call_operand.vmem [shape: f32[8,32], index: 0, kind: input, shape index: {}]   ;;  %s318_s1 = inlined_call_operand.vmem [shape: f32[64,32], index: 1, kind: input, shape index: {}]   ;;  %s319_s2 = inlined_call_operand.vmem [shape: f32[1,64], index: 2, kind: input, shape index: {}]   ;;  %s320_s3 = inlined_call_operand.hbm [shape: f32[8,64], index: 3, kind: output, shape index: {}]  }
   0x1   :  { %v16_v0 = vld [vmem:[%s318_s1] sm:$0xff]  ;;  %v17_v1 = vld [vmem:[%s318_s1 + $0x8] sm:$0xff]  ;;  %190 = vmatprep.subr.bf16.mxu0 %v236_v2  ;;  %vm268_vm1 = vmpackc.low %vm31_vm0, %vm31_vm0  ;;  %187 = vmatprep.mubr.msk.f32.mxu0 %vm237_vm2, %v238_v5 }
   0x2   :  { %v191_v3 = vpack.c.bf16 %v17_v1, %v16_v0 }
   0x4   :  { %193 = vmatpush3.bf16.xpose.msk.msra.mxu0 %vm268_vm1, %v191_v3 }
   0x5   :  { %8 = vsyncpa [#allocation3], 0  ;;  %194 = vmatprep.subr.bf16.mxu0 %v236_v2  ;;  %v18_v6 = vld [vmem:[%s318_s1 + $0x10] sm:$0xff]  ;;  %v19_v7 = vld [vmem:[%s318_s1 + $0x18] sm:$0xff]  ;;  %vm130_vm3 = vcmask 523264  }
   0x6   :  { %v195_v8 = vpack.c.bf16 %v19_v7, %v18_v6  ;;  %v20_v9 = vld [vmem:[%s318_s1 + $0x20] sm:$0xff]  ;;  %v21_v10 = vld [vmem:[%s318_s1 + $0x28] sm:$0xff]  ;;  %v22_v12 = vld [vmem:[%s318_s1 + $0x30] sm:$0xff] }
   0x7   :  { %v199_v11 = vpack.c.bf16 %v21_v10, %v20_v9  ;;  %v23_v13 = vld [vmem:[%s318_s1 + $0x38] sm:$0xff]  ;;  %v15_v15 = vld [vmem:[%s317_s0] sm:$0xff]  ;;  %s239_s1 = smov [#allocation2]  }
   0x8   :  { %v203_v14 = vpack.c.bf16 %v23_v13, %v22_v12  ;;  %v152_v16 = vld [vmem:[%s319_s2] ss:$0 sm:$0xff]  ;;  %s144_s5 = sshll.u32 %s239_s1, 4  ;;  %s145_s5 = int_to_ptr.vmem [resolvable:$true] %s144_s5 }
   0x9   :  { %s212_s0 = scalar_lea.vmem %s145_s5, 128  ;;  %p217_p1 = scmp.lt.s32.totalorder %s145_s5, %s145_s5 }
   0xa   :  { %p213_p0 = scmp.ne.s32.totalorder %s145_s5, %s212_s0  ;;  %p218_p2 = scmp.lt.s32.totalorder %s212_s0, %s212_s0 }
   0xc   :  { %197 = vmatpush3.bf16.xpose.msk.msra.mxu0 %vm268_vm1, %v195_v8  ;;  %p219_p3 = por %p218_p2, %p217_p1 }
   0xd   :  { %198 = vmatprep.subr.bf16.mxu0 %v236_v2 }
   0xe   :  { %p220_p4 = pnand %p219_p3, %p213_p0 }
  0x14   :  { %201 = vmatpush3.bf16.xpose.msk.msra.mxu0 %vm268_vm1, %v199_v11 }
  0x15   :  { %202 = vmatprep.subr.bf16.mxu0 %v236_v2 }
  0x1c   :  { %205 = vmatpush3.bf16.xpose.msk.msra.mxu0 %vm268_vm1, %v203_v14 }
  0x23   :  { %188 = vmatmul.mubr.msk.f32.vlgmr.msra.gmra.mrb[0].mxu0 %vm31_vm0, %v15_v15 }
  0xf6   :  { %v125_v17 = vpop.f32.mrb[0].mxu0 }
  0xf7   :  { %v126_v18 = vadd.f32 %v152_v16, %v125_v17  ;;  %v189_v19 = vpop.f32.mrb[1].mxu0 }
  0xf9   :  { %v129_v20 = vmul.f32 %v126_v18, %v126_v18 }
  0xfb   :  { %v131_v21 = vsel %vm130_vm3, %v129_v20, 0.0 }
  0xfc   :  { %132 = vadd.xlane.f32.xlu0 %v131_v21 }
 0x189   :  { %v133_v22 = vpop.xlane.xlu0 %132 }
 0x18a   :  { %v134_v23 = vmax.f32 %v133_v22, 1e-30 }
 0x18c   :  { %210 = vrsqrt.f32 %v134_v23 }
 0x196   :  { %v211_v24 = vpop.eup %210 }
 0x197   :  { %v136_v25 = vmul.f32 %v211_v24, %v126_v18 }
 0x199   :  { %137 = vst.msk [vmem:[#allocation2] sm:$0xff] %vm130_vm3, %v136_v25 }
 0x19a   :  { %223 = shalt.err (!%p220_p4)
}
 0x19b   :  { %s224_s7 = scalar_lea.hbm %s320_s3, 128 }
 0x19c   :  { %p225_p5 = scmp.ne.s32.totalorder %s320_s3, %s224_s7  ;;  %p228_p6 = scmp.lt.u32.totalorder %s224_s7, %s320_s3 }
 0x19e   :  { %p230_p7 = pnand %p228_p6, %p225_p5 }
 0x1a0   :  { %233 = shalt.err (!%p230_p7)
}
 0x1a1   :  { %147 = dma.vmem_to_hbm [thread:$0]  %s145_s5, 128, %s320_s3, [#allocation3]  }
 0x1a2   :  { %234 = dma.done.wait [#allocation3], 128  }
 0x1a3   :  { %235 = vsyncadd [#allocation3], 4294967168 }
 0x1a4   :  { %151 = vsyncpa [#allocation3], 1 }

// kernel: tpu_custom_call.1
= control target key start
LH: loop header
LB: loop body
LE: loop exit
PB: predicated region body
PF: predicated region fallthrough
CT: control target
= control target key end

     0   :  { %vm31_vm0 = vcmask 261120   ;;  %v236_v2 = vmov 0.0|0.0   ;;  %vm237_vm2 = vmmov 0   ;;  %v238_v5 = vmov 0.0   ;;  %s317_s0 = inlined_call_operand.vmem [shape: f32[8,32], index: 0, kind: input, shape index: {}]   ;;  %s318_s1 = inlined_call_operand.vmem [shape: f32[64,32], index: 1, kind: input, shape index: {}]   ;;  %s319_s2 = inlined_call_operand.vmem [shape: f32[1,64], index: 2, kind: input, shape index: {}]   ;;  %s320_s3 = inlined_call_operand.hbm [shape: f32[8,64], index: 3, kind: output, shape index: {}]  }
   0x1   :  { %v16_v0 = vld [vmem:[%s318_s1] sm:$0xff]  ;;  %v17_v1 = vld [vmem:[%s318_s1 + $0x8] sm:$0xff]  ;;  %190 = vmatprep.subr.bf16.mxu0 %v236_v2  ;;  %vm268_vm1 = vmpackc.low %vm31_vm0, %vm31_vm0  ;;  %187 = vmatprep.mubr.msk.f32.mxu0 %vm237_vm2, %v238_v5 }
   0x2   :  { %v191_v3 = vpack.c.bf16 %v17_v1, %v16_v0 }
   0x4   :  { %193 = vmatpush3.bf16.xpose.msk.msra.mxu0 %vm268_vm1, %v191_v3 }
   0x5   :  { %8 = vsyncpa [#allocation3], 0  ;;  %194 = vmatprep.subr.bf16.mxu0 %v236_v2  ;;  %v18_v6 = vld [vmem:[%s318_s1 + $0x10] sm:$0xff]  ;;  %v19_v7 = vld [vmem:[%s318_s1 + $0x18] sm:$0xff]  ;;  %vm130_vm3 = vcmask 523264  }
   0x6   :  { %v195_v8 = vpack.c.bf16 %v19_v7, %v18_v6  ;;  %v20_v9 = vld [vmem:[%s318_s1 + $0x20] sm:$0xff]  ;;  %v21_v10 = vld [vmem:[%s318_s1 + $0x28] sm:$0xff]  ;;  %v22_v12 = vld [vmem:[%s318_s1 + $0x30] sm:$0xff] }
   0x7   :  { %v199_v11 = vpack.c.bf16 %v21_v10, %v20_v9  ;;  %v23_v13 = vld [vmem:[%s318_s1 + $0x38] sm:$0xff]  ;;  %v15_v15 = vld [vmem:[%s317_s0] sm:$0xff]  ;;  %s239_s1 = smov [#allocation2]  }
   0x8   :  { %v203_v14 = vpack.c.bf16 %v23_v13, %v22_v12  ;;  %v152_v16 = vld [vmem:[%s319_s2] ss:$0 sm:$0xff]  ;;  %s144_s5 = sshll.u32 %s239_s1, 4  ;;  %s145_s5 = int_to_ptr.vmem [resolvable:$true] %s144_s5 }
   0x9   :  { %s212_s0 = scalar_lea.vmem %s145_s5, 128  ;;  %p217_p1 = scmp.lt.s32.totalorder %s145_s5, %s145_s5 }
   0xa   :  { %p213_p0 = scmp.ne.s32.totalorder %s145_s5, %s212_s0  ;;  %p218_p2 = scmp.lt.s32.totalorder %s212_s0, %s212_s0 }
   0xc   :  { %197 = vmatpush3.bf16.xpose.msk.msra.mxu0 %vm268_vm1, %v195_v8  ;;  %p219_p3 = por %p218_p2, %p217_p1 }
   0xd   :  { %198 = vmatprep.subr.bf16.mxu0 %v236_v2 }
   0xe   :  { %p220_p4 = pnand %p219_p3, %p213_p0 }
  0x14   :  { %201 = vmatpush3.bf16.xpose.msk.msra.mxu0 %vm268_vm1, %v199_v11 }
  0x15   :  { %202 = vmatprep.subr.bf16.mxu0 %v236_v2 }
  0x1c   :  { %205 = vmatpush3.bf16.xpose.msk.msra.mxu0 %vm268_vm1, %v203_v14 }
  0x23   :  { %188 = vmatmul.mubr.msk.f32.vlgmr.msra.gmra.mrb[0].mxu0 %vm31_vm0, %v15_v15 }
  0xf6   :  { %v125_v17 = vpop.f32.mrb[0].mxu0 }
  0xf7   :  { %v126_v18 = vadd.f32 %v152_v16, %v125_v17  ;;  %v189_v19 = vpop.f32.mrb[1].mxu0 }
  0xf9   :  { %v129_v20 = vmul.f32 %v126_v18, %v126_v18 }
  0xfb   :  { %v131_v21 = vsel %vm130_vm3, %v129_v20, 0.0 }
  0xfc   :  { %132 = vadd.xlane.f32.xlu0 %v131_v21 }
 0x189   :  { %v133_v22 = vpop.xlane.xlu0 %132 }
 0x18a   :  { %v134_v23 = vmax.f32 %v133_v22, 1e-30 }
 0x18c   :  { %210 = vrsqrt.f32 %v134_v23 }
 0x196   :  { %v211_v24 = vpop.eup %210 }
 0x197   :  { %v136_v25 = vmul.f32 %v211_v24, %v126_v18 }
 0x199   :  { %137 = vst.msk [vmem:[#allocation2] sm:$0xff] %vm130_vm3, %v136_v25 }
 0x19a   :  { %223 = shalt.err (!%p220_p4)
}
 0x19b   :  { %s224_s7 = scalar_lea.hbm %s320_s3, 128 }
 0x19c   :  { %p225_p5 = scmp.ne.s32.totalorder %s320_s3, %s224_s7  ;;  %p228_p6 = scmp.lt.u32.totalorder %s224_s7, %s320_s3 }
 0x19e   :  { %p230_p7 = pnand %p228_p6, %p225_p5 }
 0x1a0   :  { %233 = shalt.err (!%p230_p7)
}
 0x1a1   :  { %147 = dma.vmem_to_hbm [thread:$0]  %s145_s5, 128, %s320_s3, [#allocation3]  }
 0x1a2   :  { %234 = dma.done.wait [#allocation3], 128  }
 0x1a3   :  { %235 = vsyncadd [#allocation3], 4294967168 }
 0x1a4   :  { %151 = vsyncpa [#allocation3], 1 }

</bundles_post_ra>
